<compile_context>
chip_gen: v7x
topology: tpu7x:2x2x1
jax: 0.10.0
libtpu: 0.0.40
codegen_flags: <defaults>
</compile_context>

<pallas_src>
import jax
import jax.numpy as jnp
from jax.experimental import pallas as pl
from jax.experimental.pallas import tpu as pltpu

_EPS = 1e-12          # F.normalize default eps (clamp_min on the norm)
_LANES = 128          # lane width
_TS_MAX = 256         # max sublane tile: 256*128 rotations / grid step (~1.9 MiB moved)
_MIN_PALLAS_N = 1024  # below this, plain jnp fast path


def _rot6d_kernel(x_ref, o_ref):
    # x_ref: (6, TS, 128) planes [a1x,a1y,a1z,a2x,a2y,a2z]; o_ref: (9, TS, 128).
    a1x, a1y, a1z = x_ref[0], x_ref[1], x_ref[2]
    a2x, a2y, a2z = x_ref[3], x_ref[4], x_ref[5]

    # b1 = a1 * rsqrt(|a1|^2)
    inv1 = jax.lax.rsqrt(jnp.maximum(a1x * a1x + a1y * a1y + a1z * a1z, _EPS * _EPS))
    b1x, b1y, b1z = a1x * inv1, a1y * inv1, a1z * inv1

    # b2 = normalize(a2 - <b1, a2> b1)
    dot = b1x * a2x + b1y * a2y + b1z * a2z
    ux, uy, uz = a2x - dot * b1x, a2y - dot * b1y, a2z - dot * b1z
    inv2 = jax.lax.rsqrt(jnp.maximum(ux * ux + uy * uy + uz * uz, _EPS * _EPS))
    b2x, b2y, b2z = ux * inv2, uy * inv2, uz * inv2

    # b3 = b1 x b2
    b3x = b1y * b2z - b1z * b2y
    b3y = b1z * b2x - b1x * b2z
    b3z = b1x * b2y - b1y * b2x

    o_ref[0] = b1x
    o_ref[1] = b1y
    o_ref[2] = b1z
    o_ref[3] = b2x
    o_ref[4] = b2y
    o_ref[5] = b2z
    o_ref[6] = b3x
    o_ref[7] = b3y
    o_ref[8] = b3z


def _round_up(x, m):
    return ((x + m - 1) // m) * m


def _decode_jnp(x6):
    """Plain-JAX reference / tiny-batch fast path."""
    x = jnp.asarray(x6, jnp.float32).reshape(-1, 3, 2)
    a1, a2 = x[:, :, 0], x[:, :, 1]
    b1 = a1 / jnp.maximum(jnp.linalg.norm(a1, axis=1, keepdims=True), _EPS)
    dot = jnp.sum(b1 * a2, axis=1, keepdims=True)
    u = a2 - dot * b1
    b2 = u / jnp.maximum(jnp.linalg.norm(u, axis=1, keepdims=True), _EPS)
    b3 = jnp.cross(b1, b2)
    return jnp.stack([b1, b2, b3], axis=-1)


@jax.jit
def continuous_rot_repr_decoder(module_input):
    """JAX/Pallas equivalent of ContinousRotReprDecoder.forward -> (N, 3, 3)."""
    x = jnp.asarray(module_input, jnp.float32).reshape(-1, 3, 2)  # (N, 3, 2)
    n = x.shape[0]

    if n < _MIN_PALLAS_N:
        # Kernel dispatch + relayout would dominate at tiny N; let XLA fuse it.
        return _decode_jnp(x)

    # Component-planes relayout: (N,3,2) -> (6, N), rows = [a1x..a1z, a2x..a2z].
    # (Single fused XLA transpose/pad pass under jit.)
    x_cn = jnp.transpose(x, (2, 1, 0)).reshape(6, n)

    rows = pl.cdiv(n, _LANES)
    # Sublane tile: multiple of 8, capped at _TS_MAX; aim for >=2 grid blocks
    # when the batch allows it (v7x megacore sharding across 2 TensorCores).
    ts = min(_TS_MAX, max(8, _round_up(pl.cdiv(rows, 2), 8)))
    m = _round_up(rows, ts)
    n_pad = m * _LANES

    # Zero padding on the tail lanes is NaN-safe under the eps clamp.
    x_cn = jnp.pad(x_cn, ((0, 0), (0, n_pad - n))).reshape(6, m, _LANES)

    out = pl.pallas_call(
        _rot6d_kernel,
        out_shape=jax.ShapeDtypeStruct((9, m, _LANES), jnp.float32),
        grid=(m // ts,),
        in_specs=[pl.BlockSpec((6, ts, _LANES), lambda i: (0, i, 0))],
        out_specs=pl.BlockSpec((9, ts, _LANES), lambda i: (0, i, 0)),
        compiler_params=pltpu.CompilerParams(
            dimension_semantics=("parallel",)),
    )(x_cn)

    # (9, n_pad) rows [b1xyz,b2xyz,b3xyz] -> (N, 3, 3) with columns = b1,b2,b3
    # (== torch.stack([b1,b2,b3], dim=-1)).
    out9 = out.reshape(9, n_pad)[:, :n]
    return out9.reshape(3, 3, n).transpose(2, 1, 0)


if __name__ == "__main__":
    key = jax.random.PRNGKey(0)
    # Batch of 2048 six-dim continuous rotation representations (exercises the Pallas path).
    module_input = jax.random.normal(key, (2048, 6), dtype=jnp.float32)

    out = continuous_rot_repr_decoder(module_input)
    out = jax.block_until_ready(out)

    ref = _decode_jnp(module_input)
    assert out.shape == (2048, 3, 3), out.shape
    assert jnp.allclose(out, ref, atol=1e-5, rtol=1e-5), "mismatch vs reference"

    # Tiny-batch fallback path (plain jnp).
    small = jax.random.normal(jax.random.PRNGKey(1), (16, 6), dtype=jnp.float32)
    out_small = jax.block_until_ready(continuous_rot_repr_decoder(small))
    assert out_small.shape == (16, 3, 3), out_small.shape
    assert jnp.allclose(out_small, _decode_jnp(small), atol=1e-5, rtol=1e-5)

    print("KERNEL_OK")
</pallas_src>

<mosaic_0001>
module attributes {stable_mosaic.version = 11 : i64} {
  func.func @_rot6d_kernel(%arg0: i32, %arg1: memref<6x8x128xf32, #tpu.memory_space<vmem>>, %arg2: memref<9x8x128xf32, #tpu.memory_space<vmem>>) attributes {dimension_semantics = [#tpu.dimension_semantics<parallel>], iteration_bounds = array<i64: 2>, scalar_prefetch = 0 : i64, scratch_operands = 0 : i64, tpu.core_type = #tpu.core_type<tc>, window_params = [{transform_indices = @transform_0, window_bounds = array<i64: 6, 8, 128>}, {transform_indices = @transform_1, window_bounds = array<i64: 9, 8, 128>}]} {
    %c0 = arith.constant 0 : index
    %c0_0 = arith.constant 0 : index
    %c0_1 = arith.constant 0 : index
    %0 = vector.load %arg1[%c0, %c0_0, %c0_1] : memref<6x8x128xf32, #tpu.memory_space<vmem>>, vector<1x8x128xf32>
    %1 = vector.shape_cast %0 : vector<1x8x128xf32> to vector<8x128xf32>
    %c1 = arith.constant 1 : index
    %c0_2 = arith.constant 0 : index
    %c0_3 = arith.constant 0 : index
    %2 = vector.load %arg1[%c1, %c0_2, %c0_3] : memref<6x8x128xf32, #tpu.memory_space<vmem>>, vector<1x8x128xf32>
    %3 = vector.shape_cast %2 : vector<1x8x128xf32> to vector<8x128xf32>
    %c2 = arith.constant 2 : index
    %c0_4 = arith.constant 0 : index
    %c0_5 = arith.constant 0 : index
    %4 = vector.load %arg1[%c2, %c0_4, %c0_5] : memref<6x8x128xf32, #tpu.memory_space<vmem>>, vector<1x8x128xf32>
    %5 = vector.shape_cast %4 : vector<1x8x128xf32> to vector<8x128xf32>
    %c3 = arith.constant 3 : index
    %c0_6 = arith.constant 0 : index
    %c0_7 = arith.constant 0 : index
    %6 = vector.load %arg1[%c3, %c0_6, %c0_7] : memref<6x8x128xf32, #tpu.memory_space<vmem>>, vector<1x8x128xf32>
    %7 = vector.shape_cast %6 : vector<1x8x128xf32> to vector<8x128xf32>
    %c4 = arith.constant 4 : index
    %c0_8 = arith.constant 0 : index
    %c0_9 = arith.constant 0 : index
    %8 = vector.load %arg1[%c4, %c0_8, %c0_9] : memref<6x8x128xf32, #tpu.memory_space<vmem>>, vector<1x8x128xf32>
    %9 = vector.shape_cast %8 : vector<1x8x128xf32> to vector<8x128xf32>
    %c5 = arith.constant 5 : index
    %c0_10 = arith.constant 0 : index
    %c0_11 = arith.constant 0 : index
    %10 = vector.load %arg1[%c5, %c0_10, %c0_11] : memref<6x8x128xf32, #tpu.memory_space<vmem>>, vector<1x8x128xf32>
    %11 = vector.shape_cast %10 : vector<1x8x128xf32> to vector<8x128xf32>
    %12 = arith.mulf %1, %1 : vector<8x128xf32>
    %13 = arith.mulf %3, %3 : vector<8x128xf32>
    %14 = arith.addf %12, %13 : vector<8x128xf32>
    %15 = arith.mulf %5, %5 : vector<8x128xf32>
    %16 = arith.addf %14, %15 : vector<8x128xf32>
    %cst = arith.constant 1.000000e-24 : f32
    %17 = vector.broadcast %cst : f32 to vector<8x128xf32>
    %18 = arith.maximumf %16, %17 : vector<8x128xf32>
    %19 = math.rsqrt %18 : vector<8x128xf32>
    %20 = arith.mulf %1, %19 : vector<8x128xf32>
    %21 = arith.mulf %3, %19 : vector<8x128xf32>
    %22 = arith.mulf %5, %19 : vector<8x128xf32>
    %23 = arith.mulf %20, %7 : vector<8x128xf32>
    %24 = arith.mulf %21, %9 : vector<8x128xf32>
    %25 = arith.addf %23, %24 : vector<8x128xf32>
    %26 = arith.mulf %22, %11 : vector<8x128xf32>
    %27 = arith.addf %25, %26 : vector<8x128xf32>
    %28 = arith.mulf %27, %20 : vector<8x128xf32>
    %29 = arith.subf %7, %28 : vector<8x128xf32>
    %30 = arith.mulf %27, %21 : vector<8x128xf32>
    %31 = arith.subf %9, %30 : vector<8x128xf32>
    %32 = arith.mulf %27, %22 : vector<8x128xf32>
    %33 = arith.subf %11, %32 : vector<8x128xf32>
    %34 = arith.mulf %29, %29 : vector<8x128xf32>
    %35 = arith.mulf %31, %31 : vector<8x128xf32>
    %36 = arith.addf %34, %35 : vector<8x128xf32>
    %37 = arith.mulf %33, %33 : vector<8x128xf32>
    %38 = arith.addf %36, %37 : vector<8x128xf32>
    %cst_12 = arith.constant 1.000000e-24 : f32
    %39 = vector.broadcast %cst_12 : f32 to vector<8x128xf32>
    %40 = arith.maximumf %38, %39 : vector<8x128xf32>
    %41 = math.rsqrt %40 : vector<8x128xf32>
    %42 = arith.mulf %29, %41 : vector<8x128xf32>
    %43 = arith.mulf %31, %41 : vector<8x128xf32>
    %44 = arith.mulf %33, %41 : vector<8x128xf32>
    %45 = arith.mulf %21, %44 : vector<8x128xf32>
    %46 = arith.mulf %22, %43 : vector<8x128xf32>
    %47 = arith.subf %45, %46 : vector<8x128xf32>
    %48 = arith.mulf %22, %42 : vector<8x128xf32>
    %49 = arith.mulf %20, %44 : vector<8x128xf32>
    %50 = arith.subf %48, %49 : vector<8x128xf32>
    %51 = arith.mulf %20, %43 : vector<8x128xf32>
    %52 = arith.mulf %21, %42 : vector<8x128xf32>
    %53 = arith.subf %51, %52 : vector<8x128xf32>
    %c0_13 = arith.constant 0 : index
    %c0_14 = arith.constant 0 : index
    %c0_15 = arith.constant 0 : index
    %54 = vector.load %arg2[%c0_13, %c0_14, %c0_15] : memref<9x8x128xf32, #tpu.memory_space<vmem>>, vector<1x8x128xf32>
    %55 = vector.shape_cast %54 : vector<1x8x128xf32> to vector<8x128xf32>
    %56 = vector.shape_cast %20 : vector<8x128xf32> to vector<1x8x128xf32>
    tpu.vector_store %arg2[%c0_13, %c0_14, %c0_15], %56 {strides = array<i32>} : memref<9x8x128xf32, #tpu.memory_space<vmem>>, vector<1x8x128xf32>,
    %c1_16 = arith.constant 1 : index
    %c0_17 = arith.constant 0 : index
    %c0_18 = arith.constant 0 : index
    %57 = vector.load %arg2[%c1_16, %c0_17, %c0_18] : memref<9x8x128xf32, #tpu.memory_space<vmem>>, vector<1x8x128xf32>
    %58 = vector.shape_cast %57 : vector<1x8x128xf32> to vector<8x128xf32>
    %59 = vector.shape_cast %21 : vector<8x128xf32> to vector<1x8x128xf32>
    tpu.vector_store %arg2[%c1_16, %c0_17, %c0_18], %59 {strides = array<i32>} : memref<9x8x128xf32, #tpu.memory_space<vmem>>, vector<1x8x128xf32>,
    %c2_19 = arith.constant 2 : index
    %c0_20 = arith.constant 0 : index
    %c0_21 = arith.constant 0 : index
    %60 = vector.load %arg2[%c2_19, %c0_20, %c0_21] : memref<9x8x128xf32, #tpu.memory_space<vmem>>, vector<1x8x128xf32>
    %61 = vector.shape_cast %60 : vector<1x8x128xf32> to vector<8x128xf32>
    %62 = vector.shape_cast %22 : vector<8x128xf32> to vector<1x8x128xf32>
    tpu.vector_store %arg2[%c2_19, %c0_20, %c0_21], %62 {strides = array<i32>} : memref<9x8x128xf32, #tpu.memory_space<vmem>>, vector<1x8x128xf32>,
    %c3_22 = arith.constant 3 : index
    %c0_23 = arith.constant 0 : index
    %c0_24 = arith.constant 0 : index
    %63 = vector.load %arg2[%c3_22, %c0_23, %c0_24] : memref<9x8x128xf32, #tpu.memory_space<vmem>>, vector<1x8x128xf32>
    %64 = vector.shape_cast %63 : vector<1x8x128xf32> to vector<8x128xf32>
    %65 = vector.shape_cast %42 : vector<8x128xf32> to vector<1x8x128xf32>
    tpu.vector_store %arg2[%c3_22, %c0_23, %c0_24], %65 {strides = array<i32>} : memref<9x8x128xf32, #tpu.memory_space<vmem>>, vector<1x8x128xf32>,
    %c4_25 = arith.constant 4 : index
    %c0_26 = arith.constant 0 : index
    %c0_27 = arith.constant 0 : index
    %66 = vector.load %arg2[%c4_25, %c0_26, %c0_27] : memref<9x8x128xf32, #tpu.memory_space<vmem>>, vector<1x8x128xf32>
    %67 = vector.shape_cast %66 : vector<1x8x128xf32> to vector<8x128xf32>
    %68 = vector.shape_cast %43 : vector<8x128xf32> to vector<1x8x128xf32>
    tpu.vector_store %arg2[%c4_25, %c0_26, %c0_27], %68 {strides = array<i32>} : memref<9x8x128xf32, #tpu.memory_space<vmem>>, vector<1x8x128xf32>,
    %c5_28 = arith.constant 5 : index
    %c0_29 = arith.constant 0 : index
    %c0_30 = arith.constant 0 : index
    %69 = vector.load %arg2[%c5_28, %c0_29, %c0_30] : memref<9x8x128xf32, #tpu.memory_space<vmem>>, vector<1x8x128xf32>
    %70 = vector.shape_cast %69 : vector<1x8x128xf32> to vector<8x128xf32>
    %71 = vector.shape_cast %44 : vector<8x128xf32> to vector<1x8x128xf32>
    tpu.vector_store %arg2[%c5_28, %c0_29, %c0_30], %71 {strides = array<i32>} : memref<9x8x128xf32, #tpu.memory_space<vmem>>, vector<1x8x128xf32>,
    %c6 = arith.constant 6 : index
    %c0_31 = arith.constant 0 : index
    %c0_32 = arith.constant 0 : index
    %72 = vector.load %arg2[%c6, %c0_31, %c0_32] : memref<9x8x128xf32, #tpu.memory_space<vmem>>, vector<1x8x128xf32>
    %73 = vector.shape_cast %72 : vector<1x8x128xf32> to vector<8x128xf32>
    %74 = vector.shape_cast %47 : vector<8x128xf32> to vector<1x8x128xf32>
    tpu.vector_store %arg2[%c6, %c0_31, %c0_32], %74 {strides = array<i32>} : memref<9x8x128xf32, #tpu.memory_space<vmem>>, vector<1x8x128xf32>,
    %c7 = arith.constant 7 : index
    %c0_33 = arith.constant 0 : index
    %c0_34 = arith.constant 0 : index
    %75 = vector.load %arg2[%c7, %c0_33, %c0_34] : memref<9x8x128xf32, #tpu.memory_space<vmem>>, vector<1x8x128xf32>
    %76 = vector.shape_cast %75 : vector<1x8x128xf32> to vector<8x128xf32>
    %77 = vector.shape_cast %50 : vector<8x128xf32> to vector<1x8x128xf32>
    tpu.vector_store %arg2[%c7, %c0_33, %c0_34], %77 {strides = array<i32>} : memref<9x8x128xf32, #tpu.memory_space<vmem>>, vector<1x8x128xf32>,
    %c8 = arith.constant 8 : index
    %c0_35 = arith.constant 0 : index
    %c0_36 = arith.constant 0 : index
    %78 = vector.load %arg2[%c8, %c0_35, %c0_36] : memref<9x8x128xf32, #tpu.memory_space<vmem>>, vector<1x8x128xf32>
    %79 = vector.shape_cast %78 : vector<1x8x128xf32> to vector<8x128xf32>
    %80 = vector.shape_cast %53 : vector<8x128xf32> to vector<1x8x128xf32>
    tpu.vector_store %arg2[%c8, %c0_35, %c0_36], %80 {strides = array<i32>} : memref<9x8x128xf32, #tpu.memory_space<vmem>>, vector<1x8x128xf32>,
    return
  }
  func.func @transform_0(%arg0: i32) -> (i32, i32, i32) {
    %c0_i32 = arith.constant 0 : i32
    %c0_i32_0 = arith.constant 0 : i32
    %c0_i32_1 = arith.constant 0 : i32
    return %c0_i32, %arg0, %c0_i32_0 : i32, i32, i32
  }
  func.func @transform_1(%arg0: i32) -> (i32, i32, i32) {
    %c0_i32 = arith.constant 0 : i32
    %c0_i32_0 = arith.constant 0 : i32
    %c0_i32_1 = arith.constant 0 : i32
    return %c0_i32, %arg0, %c0_i32_0 : i32, i32, i32
  }
}

</mosaic_0001>

<bundles_post_ra>
// kernel: continuous_rot_repr_decoder.1
= control target key start
LH: loop header
LB: loop body
LE: loop exit
PB: predicated region body
PF: predicated region fallthrough
CT: control target
= control target key end

     0   :  { %s449_s6 = smov 0   ;;  %s451_s7 = smov 0   ;;  %s529_s0 = inlined_call_operand.vmem [shape: f32[6,16,128], index: 0, kind: input, shape index: {}]   ;;  %s530_s1 = inlined_call_operand.vmem [shape: f32[9,16,128], index: 1, kind: output, shape index: {}]  }
   0x1   :  { %s453_s8 = smov 0  }
   0x2 LB: > { %s362_s9 = sadd.s32 4294967295, %s437_s8   ;;  %s466_s10 = sadd.s32 1, %s437_s8   ;;  %s437_s8 = sphi %s453_s8, %s534_s8   ;;  %s433_s7 = sphi %s451_s7, %s533_s7   ;;  %s429_s6 = sphi %s449_s6, %s532_s6  }
   0x3   : > { %s15_s11 = ssub.s32 %s437_s8, %s466_s10  ;;  %s18_s12 = sadd.s32 1, %s433_s7 }
   0x4   : > { %p16_p0 = scmp.eq.s32.totalorder %s15_s11, 0  ;;  %p25_p1 = scmp.ne.s32.totalorder %s433_s7, %s429_s6 }
   0x5   : > { %p26_p2 = scmp.eq.s32.totalorder %s437_s8, 0  ;;  %p55_p3 = scmp.eq.s32.totalorder %s362_s9, 1 }
   0x6   : > { %s477_s13 = scalar_select %p16_p0, %s433_s7, %s18_s12  }
   0x7   : > { %p27_p4 = por %p26_p2, %p25_p1  ;;  %p479_p5 = por %p55_p3, %p25_p1 }
   0x8   : > { %p365_p6 = scmp.ge.s32.totalorder %s437_s8, 2 }
   0xa   : > { %77 = sbr.rel (%p365_p6) target bundleno = 24 (0x18), region = 16 }
  0x11   : > { %80 = sbr.rel (!%p27_p4) target bundleno = 24 (0x18), region = 20  ;;  %s82_s15 = sand.u32 (%p27_p4), 1, %s433_s7  }
  0x12   : > { %s366_s16 = sshll.u32 (%p27_p4), %s437_s8, 3  ;;  %s384_s17 = smul.u32 (%p27_p4), 48, %s82_s15 }
  0x13   : > { %s86_s20 = scalar_lea.vmem (%p27_p4), %s529_s0, %s366_s16 }
  0x14   : > { %v124_v0 = vld [vmem:[%s86_s20] sm:$0xff] (%p27_p4)  ;;  %v126_v1 = vld [vmem:[%s86_s20 + $0x10] sm:$0xff] (%p27_p4)  ;;  %s84_s21 = scalar_lea.vmem (%p27_p4), [#allocation2], %s384_s17 }
  0x15   : > { %v128_v2 = vld [vmem:[%s86_s20 + $0x20] sm:$0xff] (%p27_p4)  ;;  %v130_v3 = vld [vmem:[%s86_s20 + $0x30] sm:$0xff] (%p27_p4)  ;;  %125 = vst [vmem:[%s84_s21] sm:$0xff] (%p27_p4), %v124_v0  ;;  %127 = vst [vmem:[%s84_s21 + $0x8] sm:$0xff] (%p27_p4), %v126_v1 }
  0x16   : > { %v132_v4 = vld [vmem:[%s86_s20 + $0x40] sm:$0xff] (%p27_p4)  ;;  %v134_v5 = vld [vmem:[%s86_s20 + $0x50] sm:$0xff] (%p27_p4)  ;;  %129 = vst [vmem:[%s84_s21 + $0x10] sm:$0xff] (%p27_p4), %v128_v2  ;;  %131 = vst [vmem:[%s84_s21 + $0x18] sm:$0xff] (%p27_p4), %v130_v3 }
  0x17   : > { %133 = vst [vmem:[%s84_s21 + $0x20] sm:$0xff] (%p27_p4), %v132_v4  ;;  %135 = vst [vmem:[%s84_s21 + $0x28] sm:$0xff] (%p27_p4), %v134_v5 }
  0x18 PF: > { %p367_p7 = scmp.ge.s32.totalorder %s437_s8, 1  ;;  %p140_p8 = scmp.lt.s32.totalorder %s437_s8, 3 }
  0x1a   : > { %p141_p9 = pnand %p367_p7, %p140_p8 }
  0x1b   : > { %s147_s22 = sand.u32 (!%p141_p9), 1, %s429_s6  }
  0x1c   : > { %144 = sbr.rel (%p141_p9) target bundleno = 99 (0x63), region = 58 }
  0x1d   : > { %s385_s23 = smul.u32 (!%p141_p9), 48, %s147_s22 }
  0x1e   : > { %s386_s25 = smul.u32 (!%p141_p9), 72, %s147_s22 }
  0x1f   : > { %s149_s24 = scalar_lea.vmem (!%p141_p9), [#allocation2], %s385_s23 }
  0x20   : > { %v165_v6 = vld [vmem:[%s149_s24] sm:$0xff] (!%p141_p9)  ;;  %v368_v7 = vld [vmem:[%s149_s24 + $0x8] sm:$0xff] (!%p141_p9)  ;;  %v369_v8 = vld [vmem:[%s149_s24 + $0x10] sm:$0xff] (!%p141_p9)  ;;  %s492_s26 = scalar_lea.vmem (!%p141_p9), [#allocation3], %s386_s25 }
  0x21   : > { %v176_v9 = vmul.f32 (!%p141_p9), %v165_v6, %v165_v6  ;;  %v177_v10 = vmul.f32 (!%p141_p9), %v368_v7, %v368_v7  ;;  %v179_v11 = vmul.f32 (!%p141_p9), %v369_v8, %v369_v8  ;;  %v370_v16 = vld [vmem:[%s149_s24 + $0x18] sm:$0xff] (!%p141_p9)  ;;  %v371_v17 = vld [vmem:[%s149_s24 + $0x20] sm:$0xff] (!%p141_p9)  ;;  %v372_v18 = vld [vmem:[%s149_s24 + $0x28] sm:$0xff] (!%p141_p9) }
  0x23   : > { %v178_v12 = vadd.f32 %v177_v10, %v176_v9  ;;  %s381_s27 = sshll.u32 (%p479_p5), %s362_s9, 3 }
  0x24   : > { %s241_s30 = scalar_lea.vmem (%p479_p5), %s530_s1, %s381_s27 }
  0x25   : > { %v180_v13 = vadd.f32 %v179_v11, %v178_v12 }
  0x27   : > { %v181_v14 = vmax.f32 %v180_v13, 1e-24 }
  0x29   : > { %411 = vrsqrt.f32 %v181_v14 }
  0x33   : > { %v412_v15 = vpop.eup %411 }
  0x34   : > { %v183_v19 = vmul.f32 %v412_v15, %v165_v6  ;;  %v184_v20 = vmul.f32 %v412_v15, %v368_v7  ;;  %v185_v21 = vmul.f32 %v412_v15, %v369_v8 }
  0x36   : > { %216 = vst [vmem:[%s492_s26] sm:$0xff] %v183_v19  ;;  %373 = vst [vmem:[%s492_s26 + $0x8] sm:$0xff] %v184_v20  ;;  %v186_v22 = vmul.f32 %v370_v16, %v183_v19  ;;  %v187_v23 = vmul.f32 %v371_v17, %v184_v20  ;;  %v189_v24 = vmul.f32 %v372_v18, %v185_v21 }
  0x37   : > { %374 = vst [vmem:[%s492_s26 + $0x10] sm:$0xff] %v185_v21 }
  0x38   : > { %v188_v25 = vadd.f32 %v187_v23, %v186_v22 }
  0x3a   : > { %v190_v26 = vadd.f32 %v189_v24, %v188_v25 }
  0x3c   : > { %v191_v27 = vmul.f32 %v190_v26, %v183_v19  ;;  %v193_v28 = vmul.f32 %v190_v26, %v184_v20  ;;  %v195_v29 = vmul.f32 %v190_v26, %v185_v21 }
  0x3d   : > { %v285_v52 = vld [vmem:[%s492_s26] sm:$0xff] (%p479_p5)  ;;  %v287_v53 = vld [vmem:[%s492_s26 + $0x8] sm:$0xff] (%p479_p5) }
  0x3e   : > { %v192_v30 = vsub.f32 %v370_v16, %v191_v27  ;;  %v194_v31 = vsub.f32 %v371_v17, %v193_v28  ;;  %v196_v32 = vsub.f32 %v372_v18, %v195_v29  ;;  %v289_v54 = vld [vmem:[%s492_s26 + $0x10] sm:$0xff] (%p479_p5)  ;;  %286 = vst [vmem:[%s241_s30] sm:$0xff] (%p479_p5), %v285_v52  ;;  %288 = vst [vmem:[%s241_s30 + $0x10] sm:$0xff] (%p479_p5), %v287_v53 }
  0x3f   : > { %290 = vst [vmem:[%s241_s30 + $0x20] sm:$0xff] (%p479_p5), %v289_v54 }
  0x40   : > { %v197_v33 = vmul.f32 %v192_v30, %v192_v30  ;;  %v198_v34 = vmul.f32 %v194_v31, %v194_v31  ;;  %v200_v35 = vmul.f32 %v196_v32, %v196_v32 }
  0x42   : > { %v199_v36 = vadd.f32 %v198_v34, %v197_v33 }
  0x44   : > { %v201_v37 = vadd.f32 %v200_v35, %v199_v36 }
  0x46   : > { %v202_v38 = vmax.f32 %v201_v37, 1e-24 }
  0x48   : > { %413 = vrsqrt.f32 %v202_v38 }
  0x52   : > { %v414_v39 = vpop.eup %413 }
  0x53   : > { %v204_v40 = vmul.f32 %v414_v39, %v192_v30  ;;  %v205_v41 = vmul.f32 %v414_v39, %v194_v31  ;;  %v206_v42 = vmul.f32 %v414_v39, %v196_v32 }
  0x54   : > { %239 = sbr.rel (!%p479_p5) target bundleno = 99 (0x63), region = 66 }
  0x55   : > { %375 = vst [vmem:[%s492_s26 + $0x18] sm:$0xff] %v204_v40  ;;  %376 = vst [vmem:[%s492_s26 + $0x20] sm:$0xff] %v205_v41  ;;  %v207_v43 = vmul.f32 %v206_v42, %v184_v20  ;;  %v208_v44 = vmul.f32 %v205_v41, %v185_v21  ;;  %v210_v45 = vmul.f32 %v204_v40, %v185_v21 }
  0x56   : > { %377 = vst [vmem:[%s492_s26 + $0x28] sm:$0xff] %v206_v42  ;;  %v211_v46 = vmul.f32 %v206_v42, %v183_v19  ;;  %v213_v47 = vmul.f32 %v205_v41, %v183_v19  ;;  %v214_v48 = vmul.f32 %v204_v40, %v184_v20 }
  0x57   : > { %v209_v49 = vsub.f32 %v207_v43, %v208_v44 }
  0x58   : > { %v212_v50 = vsub.f32 %v210_v45, %v211_v46  ;;  %v215_v51 = vsub.f32 %v213_v47, %v214_v48 }
  0x59   : > { %378 = vst [vmem:[%s492_s26 + $0x30] sm:$0xff] %v209_v49 }
  0x5a   : > { %379 = vst [vmem:[%s492_s26 + $0x38] sm:$0xff] %v212_v50  ;;  %380 = vst [vmem:[%s492_s26 + $0x40] sm:$0xff] %v215_v51 }
  0x5c   : > { %v291_v55 = vld [vmem:[%s492_s26 + $0x18] sm:$0xff]  ;;  %v293_v56 = vld [vmem:[%s492_s26 + $0x20] sm:$0xff] }
  0x5d   : > { %v295_v57 = vld [vmem:[%s492_s26 + $0x28] sm:$0xff]  ;;  %292 = vst [vmem:[%s241_s30 + $0x30] sm:$0xff] %v291_v55  ;;  %294 = vst [vmem:[%s241_s30 + $0x40] sm:$0xff] %v293_v56 }
  0x5e   : > { %296 = vst [vmem:[%s241_s30 + $0x50] sm:$0xff] %v295_v57 }
  0x60   : > { %v297_v58 = vld [vmem:[%s492_s26 + $0x30] sm:$0xff] }
  0x61   : > { %v299_v59 = vld [vmem:[%s492_s26 + $0x38] sm:$0xff]  ;;  %v301_v60 = vld [vmem:[%s492_s26 + $0x40] sm:$0xff]  ;;  %298 = vst [vmem:[%s241_s30 + $0x60] sm:$0xff] %v297_v58 }
  0x62   : > { %300 = vst [vmem:[%s241_s30 + $0x70] sm:$0xff] %v299_v59  ;;  %302 = vst [vmem:[%s241_s30 + $0x80] sm:$0xff] %v301_v60 }
  0x63 PF: > { %p8_p10 = scmp.ge.s32.totalorder %s466_s10, 4   ;;  %s532_s6 = smov %s433_s7 }
  0x64   : > { %s533_s7 = smov %s477_s13  ;;  %s534_s8 = smov %s466_s10 }
  0x65   :  { %10 = sbr.rel (!%p8_p10) target bundleno = 2 (0x2), region = 148 }

</bundles_post_ra>
